<compile_context>
chip_gen: v7x
topology: tpu7x:2x2x1
jax: 0.10.0
libtpu: 0.0.40
codegen_flags: <defaults>
</compile_context>

<pallas_src>
import jax
import jax.numpy as jnp
from jax import lax
from jax.experimental import pallas as pl
from jax.experimental.pallas import tpu as pltpu

F32 = jnp.float32
BF16 = jnp.bfloat16
_EPS = 1e-5


# ---------------------------------------------------------------------------
# Hardware-aware knobs
# ---------------------------------------------------------------------------
def _vmem_limit_bytes():
    """Generation-aware scoped-VMEM request (~75% of per-core capacity)."""
    cap = 64 << 20
    try:
        info = pltpu.get_tpu_info()
        cap = int(getattr(info, "vmem_capacity_bytes", cap)) or cap
    except Exception:
        pass
    return int(cap * 3 // 4)


def _choose_tile(L, C, Ls, vmem_limit):
    """Largest lane-dense L tile whose double-buffered footprint fits ~1/4 of
    the VMEM budget and which divides the 128-padded L exactly."""
    lpad = ((L + 127) // 128) * 128
    budget = max(vmem_limit // 4, 1 << 20)
    tl = 128
    for cand in (1024, 512, 256, 128):
        if lpad % cand != 0:
            continue
        # x (bf16) + out (f32) + interpolation tile (bf16), double buffered
        if 2 * cand * (2 * C + 4 * C + 2 * Ls) <= budget:
            tl = cand
            break
    return tl, lpad


# ---------------------------------------------------------------------------
# Pallas kernels
# ---------------------------------------------------------------------------
def _zchain_kernel(x_ref, pt_w_ref, phi_s_ref, th_s_ref, zp_ref, acc_ref):
    """Per (L-half, batch, L-tile): one stacked phi|theta 1x1 conv (BN folded),
    then accumulate the partial z_idt = x_sqz @ b^T for this L-half."""
    l = pl.program_id(2)

    @pl.when(l == 0)
    def _():
        acc_ref[...] = jnp.zeros_like(acc_ref)

    c2 = phi_s_ref.shape[0]
    # single MXU push for phi and theta (stacked weight), f32 accumulate
    pt = jnp.dot(pt_w_ref[...], x_ref[0], preferred_element_type=F32)
    x_sqz = pt[:c2, :] + phi_s_ref[...]                               # (c2, TL)
    bmat = pt[c2:, :] + th_s_ref[...]                                 # (c1, TL)

    # A @ B^T contracting over the lane (L-tile) axis of both operands.  If a
    # bundle dump shows a per-tile vxpose of `bmat` becoming the binding unit,
    # produce bmat pre-transposed instead -- XLU has slack in this mem-bound
    # kernel, so this is kept simple here.
    acc_ref[...] += lax.dot_general(
        x_sqz, bmat, dimension_numbers=(((1,), (1,)), ((), ())),
        preferred_element_type=F32)                                   # (c2, c1)

    @pl.when(l == pl.num_programs(2) - 1)
    def _():
        zp_ref[0, 0] = acc_ref[...]


def _fused_map_kernel(x_ref, loc_ref, mkT_ref, z_ref, th_w_ref, th_s_ref,
                      c3_w_ref, c3_s_ref, wfl_ref, wfg_ref, f_s_ref, o_ref):
    """Per (batch, L-tile): global-branch tail (theta recompute, y=z@b,
    conv3+BN+res+ReLU), in-kernel bilinear upsample of the local map, the
    coordinate fuse x*local+x, and the final 1x1 conv with the channel concat
    folded into two dots.  Output stays lane-dense."""
    xb = x_ref[0]                                                     # (C, TL) bf16
    xf = xb.astype(F32)

    # bilinear upsample of the tiny local map, reconstructed for this tile
    loc_t = jnp.dot(loc_ref[0], mkT_ref[...],
                    preferred_element_type=F32)                       # (C, TL)

    # global branch tail
    bmat = jnp.dot(th_w_ref[...], xb,
                   preferred_element_type=F32) + th_s_ref[...]        # (c1, TL)
    y = jnp.dot(z_ref[0], bmat, preferred_element_type=F32)           # (c2, TL)
    g = jnp.dot(c3_w_ref[...], y.astype(BF16), preferred_element_type=F32)
    g = jnp.maximum(g + c3_s_ref[...] + xf, 0.0)                      # (C, TL)

    # coordinate branch fuse: x * local + x
    sl = xf * loc_t + xf                                              # (C, TL)

    # final 1x1 conv + BN; concat folded into two dots on the split weight
    out = (jnp.dot(wfl_ref[...], sl.astype(BF16), preferred_element_type=F32)
           + jnp.dot(wfg_ref[...], g.astype(BF16), preferred_element_type=F32)
           + f_s_ref[...])
    o_ref[0] = out.astype(o_ref.dtype)


# ---------------------------------------------------------------------------
# Pallas wrappers
# ---------------------------------------------------------------------------
def _const_spec(arr, grid_rank):
    nd = arr.ndim
    if grid_rank == 2:
        return pl.BlockSpec(arr.shape, lambda i, l, _nd=nd: (0,) * _nd)
    return pl.BlockSpec(arr.shape, lambda s, i, l, _nd=nd: (0,) * _nd)


def zchain_call(x_bf, fp, tl, n_split, vmem_limit):
    n, C, Lp = x_bf.shape
    c2 = fp["phi_s"].shape[0]
    c1 = fp["theta_s"].shape[0]
    nlt = Lp // tl
    nlt_h = nlt // n_split

    weights = (fp["pt_w"], fp["phi_s"], fp["theta_s"])

    return pl.pallas_call(
        _zchain_kernel,
        out_shape=jax.ShapeDtypeStruct((n, n_split, c2, c1), F32),
        grid=(n_split, n, nlt_h),
        in_specs=[pl.BlockSpec((1, C, tl),
                               lambda s, i, l, _h=nlt_h: (i, 0, s * _h + l))]
                 + [_const_spec(w, 3) for w in weights],
        out_specs=pl.BlockSpec((1, 1, c2, c1), lambda s, i, l: (i, s, 0, 0)),
        scratch_shapes=[pltpu.VMEM((c2, c1), F32)],
        compiler_params=pltpu.CompilerParams(
            dimension_semantics=("parallel", "parallel", "arbitrary"),
            vmem_limit_bytes=vmem_limit),
    )(x_bf, *weights)


def fused_map_call(x_bf, loc_bf, mkT, z, fp, tl, vmem_limit, out_dtype):
    n, C, Lp = x_bf.shape
    Ls = loc_bf.shape[2]
    c2, c1 = z.shape[1], z.shape[2]
    nlt = Lp // tl

    weights = (fp["theta_w"], fp["theta_s"], fp["conv3_w"], fp["conv3_s"],
               fp["final_w_loc"], fp["final_w_glob"], fp["final_s"])

    return pl.pallas_call(
        _fused_map_kernel,
        out_shape=jax.ShapeDtypeStruct((n, C, Lp), out_dtype),
        grid=(n, nlt),
        in_specs=[pl.BlockSpec((1, C, tl), lambda i, l: (i, 0, l)),
                  pl.BlockSpec((1, C, Ls), lambda i, l: (i, 0, 0)),
                  pl.BlockSpec((Ls, tl), lambda i, l: (0, l)),
                  pl.BlockSpec((1, c2, c1), lambda i, l: (i, 0, 0))]
                 + [_const_spec(w, 2) for w in weights],
        out_specs=pl.BlockSpec((1, C, tl), lambda i, l: (i, 0, l)),
        compiler_params=pltpu.CompilerParams(
            dimension_semantics=("parallel", "parallel"),
            vmem_limit_bytes=vmem_limit),
    )(x_bf, loc_bf, mkT, z, *weights)


# ---------------------------------------------------------------------------
# Host-side BN folding (inference mode, real running statistics)
# ---------------------------------------------------------------------------
def bn_affine(bn, conv_bias=None, eps=_EPS):
    """y = gamma * (x + bias - mean) / sqrt(var + eps) + beta -> scale, shift."""
    scale = bn["gamma"] * lax.rsqrt(bn["var"] + eps)
    base = -bn["mean"] if conv_bias is None else conv_bias - bn["mean"]
    return scale, scale * base + bn["beta"]


def fold_global_params(p):
    """Fold BN into the 1x1-conv weights; stack phi|theta; split final weight;
    cast big-matmul weights to bf16 (shifts stay f32)."""
    s_phi, t_phi = bn_affine(p["bn_phi"])
    s_th, t_th = bn_affine(p["bn_theta"])
    s_adj, t_adj = bn_affine(p["bn_adj"])
    s_wg, t_wg = bn_affine(p["bn_wg"])
    s3, t3 = bn_affine(p["bn3"])
    s_f, t_f = bn_affine(p["bn_final"])

    C = p["conv3_w"].shape[0]
    phi_w = s_phi[:, None] * p["phi_w"]                      # (c2, C)
    th_w = s_th[:, None] * p["theta_w"]                      # (c1, C)
    wf = s_f[:, None] * p["final_w"]                         # (C, 2C)

    return dict(
        pt_w=jnp.concatenate([phi_w, th_w], axis=0).astype(BF16),   # (c2+c1, C)
        phi_s=t_phi.reshape(-1, 1).astype(F32),
        theta_w=th_w.astype(BF16),
        theta_s=t_th.reshape(-1, 1).astype(F32),
        # (W_adj @ z^T)^T = z @ W_adj^T with BN over the c1 (output) axis:
        adj_wT=(s_adj[:, None] * p["adj_w"]).T.astype(F32),
        adj_s=t_adj.reshape(1, -1).astype(F32),
        wg_w=(s_wg[:, None] * p["wg_w"]).astype(F32),
        wg_s=t_wg.reshape(-1, 1).astype(F32),
        conv3_w=(s3[:, None] * p["conv3_w"]).astype(BF16),
        conv3_s=t3.reshape(-1, 1).astype(F32),
        final_w_loc=wf[:, :C].astype(BF16),
        final_w_glob=wf[:, C:].astype(BF16),
        final_s=t_f.reshape(-1, 1).astype(F32),
    )


def _z_tail(z_idt, fp):
    """Tiny (c2,c1) adj/wg chain: conv_adj+bn (on transposed z) + residual,
    then conv_wg+bn.  A few KB of work -> plain XLA (per review)."""
    z2 = jnp.einsum("nij,jk->nik", z_idt, fp["adj_wT"]) + fp["adj_s"][None] + z_idt
    return jnp.einsum("oi,nij->noj", fp["wg_w"], z2) + fp["wg_s"][None]


# ---------------------------------------------------------------------------
# Local / coordinate branch (tiny spatial sizes -> plain XLA per perf review)
# ---------------------------------------------------------------------------
def local_branch(x, params):
    # TODO(synk): 3x3 strided depthwise convs at these tiny sizes have no
    # profitable Pallas tiling; kept in plain XLA (lax.conv_general_dilated).
    y = x
    c = x.shape[1]
    for w, bn in zip(params["local_w"], params["local_bn"]):
        y = lax.conv_general_dilated(
            y, w, window_strides=(2, 2), padding=((1, 1), (1, 1)),
            dimension_numbers=("NCHW", "OIHW", "NCHW"),
            feature_group_count=c)
        s, t = bn_affine(bn)
        y = y * s[None, :, None, None] + t[None, :, None, None]
    return y


def spatial_gcn_local(x, p):
    # TODO(synk): this SpatialGCN only ever runs on the 8x-downsampled local
    # branch (L as small as 4-64); lane-sparse Pallas blocks would be pure
    # overhead here, so it stays in plain XLA by design.
    n, c, h, w = x.shape
    L = h * w
    xm = x.reshape(n, c, L)
    node_k = jnp.einsum("oc,ncl->nol", p["k_w"], xm) + p["k_b"][None, :, None]
    node_v = jnp.einsum("oc,ncl->nol", p["v_w"], xm) + p["v_b"][None, :, None]
    node_q = jnp.einsum("oc,ncl->nol", p["q_w"], xm) + p["q_b"][None, :, None]
    av = jax.nn.softmax(jnp.einsum("ncl,nml->ncm", node_q, node_v), axis=-1)
    avw = jnp.einsum("ncl,ncm->nml", node_k, av)             # (k^T @ av)^T
    avw = jnp.einsum("om,nml->nol", p["wg_w"], avw)
    s_wg, t_wg = bn_affine(p["bn_wg"])
    avw = avw * s_wg[None, :, None] + t_wg[None, :, None]
    out = jnp.einsum("oc,ncl->nol", p["out_w"], avw)
    s_o, t_o = bn_affine(p["bn_out"], conv_bias=p["out_b"])
    out = out * s_o[None, :, None] + t_o[None, :, None]
    return jax.nn.relu(out + xm).reshape(n, c, h, w)


def _bilinear_matrix(out_size, in_size):
    """align_corners=True 1-D bilinear interpolation matrix (out, in)."""
    if in_size == 1:
        return jnp.ones((out_size, 1), F32)
    src = jnp.arange(out_size, dtype=F32) * (in_size - 1) / (out_size - 1)
    i0 = jnp.clip(jnp.floor(src).astype(jnp.int32), 0, in_size - 2)
    frac = src - i0.astype(F32)
    rows = jnp.arange(out_size)
    m = jnp.zeros((out_size, in_size), F32)
    m = m.at[rows, i0].add(1.0 - frac)
    m = m.at[rows, i0 + 1].add(frac)
    return m


# ---------------------------------------------------------------------------
# Full forward (Pallas path)
# ---------------------------------------------------------------------------
def dual_gcn_forward(feat, params, out_dtype=F32):
    n, C, H, W = feat.shape
    L = H * W
    vmem_limit = _vmem_limit_bytes()

    # ---- local / coordinate branch (plain XLA, tiny spatial) ----
    loc = local_branch(feat, params)                         # (n, C, Hs, Ws)
    loc = spatial_gcn_local(loc, params["sgcn"])
    Hs, Ws = loc.shape[2], loc.shape[3]
    Ls = Hs * Ws

    # interpolation matrix (constant-foldable), applied inside kernel 2
    wh = _bilinear_matrix(H, Hs)
    ww = _bilinear_matrix(W, Ws)
    mkT = jnp.einsum("hk,wm->hwkm", wh, ww).reshape(L, Ls).T      # (Ls, L)

    # ---- tiling / lane padding ----
    tl, Lp = _choose_tile(L, C, Ls, vmem_limit)
    nlt = Lp // tl
    n_split = 2 if (nlt % 2 == 0 and nlt >= 2) else 1

    # bf16 activations in HBM (producer would already emit bf16 in production)
    x_bf = feat.reshape(n, C, L).astype(BF16)
    mkT = mkT.astype(BF16)
    if Lp > L:
        x_bf = jnp.pad(x_bf, ((0, 0), (0, 0), (0, Lp - L)))
        mkT = jnp.pad(mkT, ((0, 0), (0, Lp - L)))
    loc_bf = loc.reshape(n, C, Ls).astype(BF16)

    fp = fold_global_params(params)

    # ---- kernel 1: z-chain partial reductions over L (split for megacore) ----
    zpart = zchain_call(x_bf, fp, tl, n_split, vmem_limit)   # (n, split, c2, c1)
    z_idt = zpart.sum(axis=1)
    if Lp > L:
        # each zero-padded column contributes exactly phi_s (x) theta_s^T
        z_idt = z_idt - (Lp - L) * (fp["phi_s"] @ fp["theta_s"].T)
    z = _z_tail(z_idt, fp)                                   # (n, c2, c1), tiny

    # ---- kernel 2: fused map (global tail + upsample + fuse + final conv) ----
    out = fused_map_call(x_bf, loc_bf, mkT, z, fp, tl, vmem_limit, out_dtype)
    if Lp > L:
        out = out[:, :, :L]
    return out.reshape(n, C, H, W)


# ---------------------------------------------------------------------------
# Pure-JAX f32 reference of the PyTorch forward (for validation)
# ---------------------------------------------------------------------------
def dual_gcn_reference(feat, params):
    n, C, H, W = feat.shape
    L = H * W
    x = feat

    loc = local_branch(feat, params)
    loc = spatial_gcn_local(loc, params["sgcn"])
    wh = _bilinear_matrix(H, loc.shape[2])
    ww = _bilinear_matrix(W, loc.shape[3])
    local_up = jnp.einsum("oh,nchw,pw->ncop", wh, loc, ww)
    spatial_local_feat = x * local_up + x

    xm = x.reshape(n, C, L)
    s, t = bn_affine(params["bn_phi"])
    x_sqz = jnp.einsum("oc,ncl->nol", s[:, None] * params["phi_w"], xm) + t[None, :, None]
    s, t = bn_affine(params["bn_theta"])
    bmat = jnp.einsum("oc,ncl->nol", s[:, None] * params["theta_w"], xm) + t[None, :, None]

    z_idt = jnp.einsum("ncl,nml->ncm", x_sqz, bmat)
    zT = jnp.einsum("oi,nij->noj", params["adj_w"], jnp.swapaxes(z_idt, 1, 2))
    s, t = bn_affine(params["bn_adj"])
    zT = zT * s[None, :, None] + t[None, :, None]
    z = jnp.swapaxes(zT, 1, 2) + z_idt
    z = jnp.einsum("oi,nij->noj", params["wg_w"], z)
    s, t = bn_affine(params["bn_wg"])
    z = z * s[None, :, None] + t[None, :, None]

    y = jnp.einsum("ncm,nml->ncl", z, bmat)
    s, t = bn_affine(params["bn3"])
    y = jnp.einsum("oc,ncl->nol", s[:, None] * params["conv3_w"], y) + t[None, :, None]
    g = jax.nn.relu(xm + y).reshape(n, C, H, W)

    cat = jnp.concatenate([spatial_local_feat, g], axis=1)
    s, t = bn_affine(params["bn_final"])
    out = jnp.einsum("oc,nchw->nohw", s[:, None] * params["final_w"], cat)
    return out + t[None, :, None, None]


# ---------------------------------------------------------------------------
# Deterministic parameter initialization (synthetic, matches module __init__;
# BN carries non-trivial running statistics to exercise the general fold)
# ---------------------------------------------------------------------------
def init_params(key, planes, ratio=4):
    c1 = planes // ratio
    c2 = c1 * 2
    inter = planes // 2

    def nxt():
        nonlocal key
        key, sub = jax.random.split(key)
        return sub

    def w(shape, scale=0.2):
        return scale * jax.random.normal(nxt(), shape, dtype=F32)

    def vec(m, scale=0.05):
        return scale * jax.random.normal(nxt(), (m,), dtype=F32)

    def bn(m):
        return dict(
            gamma=1.0 + 0.1 * jax.random.normal(nxt(), (m,), dtype=F32),
            beta=vec(m),
            mean=0.1 * jax.random.normal(nxt(), (m,), dtype=F32),
            var=jnp.exp(0.2 * jax.random.normal(nxt(), (m,), dtype=F32)),
        )

    return dict(
        phi_w=w((c2, planes)), bn_phi=bn(c2),
        theta_w=w((c1, planes)), bn_theta=bn(c1),
        adj_w=w((c1, c1)), bn_adj=bn(c1),
        wg_w=w((c2, c2)), bn_wg=bn(c2),
        conv3_w=w((planes, c2)), bn3=bn(planes),
        final_w=w((planes, 2 * planes)), bn_final=bn(planes),
        local_w=[w((planes, 1, 3, 3)) for _ in range(3)],
        local_bn=[bn(planes) for _ in range(3)],
        sgcn=dict(
            k_w=w((inter, planes)), k_b=vec(inter),
            v_w=w((inter, planes)), v_b=vec(inter),
            q_w=w((inter, planes)), q_b=vec(inter),
            wg_w=w((inter, inter)), bn_wg=bn(inter),
            out_w=w((planes, inter)), out_b=vec(planes),
            bn_out=bn(planes),
        ),
    )


if __name__ == "__main__":
    configs = [
        # basic smoke (single L tile)
        dict(planes=8, ratio=4, n=2, H=16, W=16),
        # multi-tile accumulation + split L-reduction (megacore path)
        dict(planes=8, ratio=4, n=1, H=64, W=64),
        # non-128-multiple L -> lane padding + exact pad compensation
        dict(planes=16, ratio=4, n=1, H=36, W=20),
    ]

    fwd = jax.jit(dual_gcn_forward)
    ref_fn = jax.jit(dual_gcn_reference)

    key = jax.random.PRNGKey(0)
    for cfg in configs:
        key, kp, kx = jax.random.split(key, 3)
        params = init_params(kp, cfg["planes"], cfg["ratio"])
        feat = jax.random.normal(
            kx, (cfg["n"], cfg["planes"], cfg["H"], cfg["W"]), dtype=F32)

        out = jax.block_until_ready(fwd(feat, params))
        ref = jax.block_until_ready(ref_fn(feat, params))

        assert out.shape == feat.shape, (cfg, out.shape)
        assert bool(jnp.all(jnp.isfinite(out))), cfg
        err = float(jnp.max(jnp.abs(out - ref)) /
                    (jnp.max(jnp.abs(ref)) + 1e-6))
        assert err < 0.1, (cfg, err)   # loose bf16-vs-f32 tolerance

    print("KERNEL_OK")
</pallas_src>

<mosaic_0001>
module attributes {stable_mosaic.version = 11 : i64} {
  func.func private @main(%arg0: i32) attributes {dimension_semantics = [#tpu.dimension_semantics<core_parallel>], iteration_bounds = array<i64: 2>, tpu.core_type = #tpu.core_type<sc_scalar_subcore>, window_params = []} {
    return
  }
}

module attributes {stable_mosaic.version = 11 : i64} {
  func.func private @main(%arg0: i32) attributes {dimension_semantics = [#tpu.dimension_semantics<core_parallel>], iteration_bounds = array<i64: 2>, tpu.core_type = #tpu.core_type<sc_scalar_subcore>, window_params = []} {
    return
  }
}

module attributes {stable_mosaic.version = 11 : i64} {
  func.func @_zchain_kernel(%arg0: i32, %arg1: i32, %arg2: i32, %arg3: memref<1x8x256xbf16, #tpu.memory_space<vmem>>, %arg4: memref<6x8xbf16, #tpu.memory_space<vmem>>, %arg5: memref<4x1xf32, #tpu.memory_space<vmem>>, %arg6: memref<2x1xf32, #tpu.memory_space<vmem>>, %arg7: memref<1x1x4x2xf32, #tpu.memory_space<vmem>>, %arg8: memref<4x2xf32, #tpu.memory_space<vmem>>) attributes {dimension_semantics = [#tpu.dimension_semantics<parallel>, #tpu.dimension_semantics<parallel>, #tpu.dimension_semantics<arbitrary>], iteration_bounds = array<i64: 1, 2, 1>, scalar_prefetch = 0 : i64, scratch_operands = 1 : i64, tpu.core_type = #tpu.core_type<tc>, window_params = [{transform_indices = @transform_0, window_bounds = array<i64: 1, 8, 256>}, {pipeline_mode = #tpu.pipeline_mode<synchronous>, transform_indices = @transform_1, window_bounds = array<i64: 6, 8>}, {pipeline_mode = #tpu.pipeline_mode<synchronous>, transform_indices = @transform_2, window_bounds = array<i64: 4, 1>}, {pipeline_mode = #tpu.pipeline_mode<synchronous>, transform_indices = @transform_3, window_bounds = array<i64: 2, 1>}, {transform_indices = @transform_4, window_bounds = array<i64: 1, 1, 4, 2>}]} {
    %c0_i32 = arith.constant 0 : i32
    %0 = arith.cmpi eq, %arg2, %c0_i32 : i32
    %1 = arith.extui %0 : i1 to i32
    %c0_i32_0 = arith.constant 0 : i32
    %2 = arith.cmpi ne, %1, %c0_i32_0 : i32
    scf.if %2 {
      %cst_16 = arith.constant 0.000000e+00 : f32
      %22 = vector.broadcast %cst_16 : f32 to vector<4x2xf32>
      %c0_17 = arith.constant 0 : index
      %c0_18 = arith.constant 0 : index
      %23 = vector.load %arg8[%c0_17, %c0_18] : memref<4x2xf32, #tpu.memory_space<vmem>>, vector<4x2xf32>
      tpu.vector_store %arg8[%c0_17, %c0_18], %22 {strides = array<i32>} : memref<4x2xf32, #tpu.memory_space<vmem>>, vector<4x2xf32>,
    } else {
    }
    %c0 = arith.constant 0 : index
    %c0_1 = arith.constant 0 : index
    %3 = vector.load %arg4[%c0, %c0_1] : memref<6x8xbf16, #tpu.memory_space<vmem>>, vector<6x8xbf16>
    %c0_2 = arith.constant 0 : index
    %c0_3 = arith.constant 0 : index
    %c0_4 = arith.constant 0 : index
    %4 = vector.load %arg3[%c0_2, %c0_3, %c0_4] : memref<1x8x256xbf16, #tpu.memory_space<vmem>>, vector<1x8x256xbf16>
    %5 = vector.shape_cast %4 : vector<1x8x256xbf16> to vector<8x256xbf16>
    %cst = arith.constant dense<0.000000e+00> : vector<6x256xf32>
    %6 = tpu.matmul %3, %5, %cst {dimension_numbers = #tpu.dot_dimension_numbers<[1], [0], [0], [1], [0, 0, 1, 1], [], []>} : vector<6x8xbf16>, vector<8x256xbf16>, vector<6x256xf32> -> vector<6x256xf32>
    %7 = vector.extract_strided_slice %6 {offsets = [0, 0], sizes = [4, 256], strides = [1, 1]} : vector<6x256xf32> to vector<4x256xf32>
    %c0_5 = arith.constant 0 : index
    %c0_6 = arith.constant 0 : index
    %8 = vector.load %arg5[%c0_5, %c0_6] : memref<4x1xf32, #tpu.memory_space<vmem>>, vector<4x1xf32>
    %9 = vector.broadcast %8 : vector<4x1xf32> to vector<4x256xf32>
    %10 = arith.addf %7, %9 : vector<4x256xf32>
    %11 = vector.extract_strided_slice %6 {offsets = [4, 0], sizes = [2, 256], strides = [1, 1]} : vector<6x256xf32> to vector<2x256xf32>
    %c0_7 = arith.constant 0 : index
    %c0_8 = arith.constant 0 : index
    %12 = vector.load %arg6[%c0_7, %c0_8] : memref<2x1xf32, #tpu.memory_space<vmem>>, vector<2x1xf32>
    %13 = vector.broadcast %12 : vector<2x1xf32> to vector<2x256xf32>
    %14 = arith.addf %11, %13 : vector<2x256xf32>
    %c0_9 = arith.constant 0 : index
    %c0_10 = arith.constant 0 : index
    %15 = vector.load %arg8[%c0_9, %c0_10] : memref<4x2xf32, #tpu.memory_space<vmem>>, vector<4x2xf32>
    %cst_11 = arith.constant dense<0.000000e+00> : vector<4x2xf32>
    %16 = tpu.matmul %10, %14, %cst_11 {dimension_numbers = #tpu.dot_dimension_numbers<[1], [1], [0], [0], [0, 0, 1, 0], [], []>} : vector<4x256xf32>, vector<2x256xf32>, vector<4x2xf32> -> vector<4x2xf32>
    %17 = arith.addf %15, %16 : vector<4x2xf32>
    %c0_12 = arith.constant 0 : index
    %c0_13 = arith.constant 0 : index
    %18 = vector.load %arg8[%c0_12, %c0_13] : memref<4x2xf32, #tpu.memory_space<vmem>>, vector<4x2xf32>
    tpu.vector_store %arg8[%c0_12, %c0_13], %17 {strides = array<i32>} : memref<4x2xf32, #tpu.memory_space<vmem>>, vector<4x2xf32>,
    %c0_i32_14 = arith.constant 0 : i32
    %19 = arith.cmpi eq, %arg2, %c0_i32_14 : i32
    %20 = arith.extui %19 : i1 to i32
    %c0_i32_15 = arith.constant 0 : i32
    %21 = arith.cmpi ne, %20, %c0_i32_15 : i32
    scf.if %21 {
      %c0_16 = arith.constant 0 : index
      %c0_17 = arith.constant 0 : index
      %22 = vector.load %arg8[%c0_16, %c0_17] : memref<4x2xf32, #tpu.memory_space<vmem>>, vector<4x2xf32>
      %c0_18 = arith.constant 0 : index
      %c0_19 = arith.constant 0 : index
      %c0_20 = arith.constant 0 : index
      %c0_21 = arith.constant 0 : index
      %23 = vector.load %arg7[%c0_18, %c0_19, %c0_20, %c0_21] : memref<1x1x4x2xf32, #tpu.memory_space<vmem>>, vector<1x1x4x2xf32>
      %24 = vector.shape_cast %23 : vector<1x1x4x2xf32> to vector<4x2xf32>
      %25 = vector.shape_cast %22 : vector<4x2xf32> to vector<1x1x4x2xf32>
      tpu.vector_store %arg7[%c0_18, %c0_19, %c0_20, %c0_21], %25 {strides = array<i32>} : memref<1x1x4x2xf32, #tpu.memory_space<vmem>>, vector<1x1x4x2xf32>,
    } else {
    }
    return
  }
  func.func @transform_0(%arg0: i32, %arg1: i32, %arg2: i32) -> (i32, i32, i32) {
    %c1_i32 = arith.constant 1 : i32
    %0 = arith.muli %arg0, %c1_i32 : i32
    %1 = arith.addi %0, %arg2 : i32
    %c0_i32 = arith.constant 0 : i32
    %c0_i32_0 = arith.constant 0 : i32
    return %arg1, %c0_i32, %1 : i32, i32, i32
  }
  func.func @transform_1(%arg0: i32, %arg1: i32, %arg2: i32) -> (i32, i32) {
    %c0_i32 = arith.constant 0 : i32
    %c0_i32_0 = arith.constant 0 : i32
    %c0_i32_1 = arith.constant 0 : i32
    return %c0_i32, %c0_i32_0 : i32, i32
  }
  func.func @transform_2(%arg0: i32, %arg1: i32, %arg2: i32) -> (i32, i32) {
    %c0_i32 = arith.constant 0 : i32
    %c0_i32_0 = arith.constant 0 : i32
    %c0_i32_1 = arith.constant 0 : i32
    return %c0_i32, %c0_i32_0 : i32, i32
  }
  func.func @transform_3(%arg0: i32, %arg1: i32, %arg2: i32) -> (i32, i32) {
    %c0_i32 = arith.constant 0 : i32
    %c0_i32_0 = arith.constant 0 : i32
    %c0_i32_1 = arith.constant 0 : i32
    return %c0_i32, %c0_i32_0 : i32, i32
  }
  func.func @transform_4(%arg0: i32, %arg1: i32, %arg2: i32) -> (i32, i32, i32, i32) {
    %c0_i32 = arith.constant 0 : i32
    %c0_i32_0 = arith.constant 0 : i32
    %c0_i32_1 = arith.constant 0 : i32
    return %arg1, %arg0, %c0_i32, %c0_i32_0 : i32, i32, i32, i32
  }
}

module attributes {stable_mosaic.version = 11 : i64} {
  func.func @_fused_map_kernel(%arg0: i32, %arg1: i32, %arg2: memref<1x8x256xbf16, #tpu.memory_space<vmem>>, %arg3: memref<1x8x4xbf16, #tpu.memory_space<vmem>>, %arg4: memref<4x256xbf16, #tpu.memory_space<vmem>>, %arg5: memref<1x4x2xf32, #tpu.memory_space<vmem>>, %arg6: memref<2x8xbf16, #tpu.memory_space<vmem>>, %arg7: memref<2x1xf32, #tpu.memory_space<vmem>>, %arg8: memref<8x4xbf16, #tpu.memory_space<vmem>>, %arg9: memref<8x1xf32, #tpu.memory_space<vmem>>, %arg10: memref<8x8xbf16, #tpu.memory_space<vmem>>, %arg11: memref<8x8xbf16, #tpu.memory_space<vmem>>, %arg12: memref<8x1xf32, #tpu.memory_space<vmem>>, %arg13: memref<1x8x256xf32, #tpu.memory_space<vmem>>) attributes {dimension_semantics = [#tpu.dimension_semantics<parallel>, #tpu.dimension_semantics<parallel>], iteration_bounds = array<i64: 2, 1>, scalar_prefetch = 0 : i64, scratch_operands = 0 : i64, tpu.core_type = #tpu.core_type<tc>, window_params = [{transform_indices = @transform_0, window_bounds = array<i64: 1, 8, 256>}, {transform_indices = @transform_1, window_bounds = array<i64: 1, 8, 4>}, {transform_indices = @transform_2, window_bounds = array<i64: 4, 256>}, {transform_indices = @transform_3, window_bounds = array<i64: 1, 4, 2>}, {pipeline_mode = #tpu.pipeline_mode<synchronous>, transform_indices = @transform_4, window_bounds = array<i64: 2, 8>}, {pipeline_mode = #tpu.pipeline_mode<synchronous>, transform_indices = @transform_5, window_bounds = array<i64: 2, 1>}, {pipeline_mode = #tpu.pipeline_mode<synchronous>, transform_indices = @transform_6, window_bounds = array<i64: 8, 4>}, {pipeline_mode = #tpu.pipeline_mode<synchronous>, transform_indices = @transform_7, window_bounds = array<i64: 8, 1>}, {pipeline_mode = #tpu.pipeline_mode<synchronous>, transform_indices = @transform_8, window_bounds = array<i64: 8, 8>}, {pipeline_mode = #tpu.pipeline_mode<synchronous>, transform_indices = @transform_9, window_bounds = array<i64: 8, 8>}, {pipeline_mode = #tpu.pipeline_mode<synchronous>, transform_indices = @transform_10, window_bounds = array<i64: 8, 1>}, {transform_indices = @transform_11, window_bounds = array<i64: 1, 8, 256>}]} {
    %c0 = arith.constant 0 : index
    %c0_0 = arith.constant 0 : index
    %c0_1 = arith.constant 0 : index
    %0 = vector.load %arg2[%c0, %c0_0, %c0_1] : memref<1x8x256xbf16, #tpu.memory_space<vmem>>, vector<1x8x256xbf16>
    %1 = vector.shape_cast %0 : vector<1x8x256xbf16> to vector<8x256xbf16>
    %2 = arith.extf %1 : vector<8x256xbf16> to vector<8x256xf32>
    %c0_2 = arith.constant 0 : index
    %c0_3 = arith.constant 0 : index
    %c0_4 = arith.constant 0 : index
    %3 = vector.load %arg3[%c0_2, %c0_3, %c0_4] : memref<1x8x4xbf16, #tpu.memory_space<vmem>>, vector<1x8x4xbf16>
    %4 = vector.shape_cast %3 : vector<1x8x4xbf16> to vector<8x4xbf16>
    %c0_5 = arith.constant 0 : index
    %c0_6 = arith.constant 0 : index
    %5 = vector.load %arg4[%c0_5, %c0_6] : memref<4x256xbf16, #tpu.memory_space<vmem>>, vector<4x256xbf16>
    %cst = arith.constant dense<0.000000e+00> : vector<8x256xf32>
    %6 = tpu.matmul %4, %5, %cst {dimension_numbers = #tpu.dot_dimension_numbers<[1], [0], [0], [1], [0, 0, 1, 1], [], []>} : vector<8x4xbf16>, vector<4x256xbf16>, vector<8x256xf32> -> vector<8x256xf32>
    %c0_7 = arith.constant 0 : index
    %c0_8 = arith.constant 0 : index
    %7 = vector.load %arg6[%c0_7, %c0_8] : memref<2x8xbf16, #tpu.memory_space<vmem>>, vector<2x8xbf16>
    %cst_9 = arith.constant dense<0.000000e+00> : vector<2x256xf32>
    %8 = tpu.matmul %7, %1, %cst_9 {dimension_numbers = #tpu.dot_dimension_numbers<[1], [0], [0], [1], [0, 0, 1, 1], [], []>} : vector<2x8xbf16>, vector<8x256xbf16>, vector<2x256xf32> -> vector<2x256xf32>
    %c0_10 = arith.constant 0 : index
    %c0_11 = arith.constant 0 : index
    %9 = vector.load %arg7[%c0_10, %c0_11] : memref<2x1xf32, #tpu.memory_space<vmem>>, vector<2x1xf32>
    %10 = vector.broadcast %9 : vector<2x1xf32> to vector<2x256xf32>
    %11 = arith.addf %8, %10 : vector<2x256xf32>
    %c0_12 = arith.constant 0 : index
    %c0_13 = arith.constant 0 : index
    %c0_14 = arith.constant 0 : index
    %12 = vector.load %arg5[%c0_12, %c0_13, %c0_14] : memref<1x4x2xf32, #tpu.memory_space<vmem>>, vector<1x4x2xf32>
    %13 = vector.shape_cast %12 : vector<1x4x2xf32> to vector<4x2xf32>
    %cst_15 = arith.constant dense<0.000000e+00> : vector<4x256xf32>
    %14 = tpu.matmul %13, %11, %cst_15 {dimension_numbers = #tpu.dot_dimension_numbers<[1], [0], [0], [1], [0, 0, 1, 1], [], []>} : vector<4x2xf32>, vector<2x256xf32>, vector<4x256xf32> -> vector<4x256xf32>
    %c0_16 = arith.constant 0 : index
    %c0_17 = arith.constant 0 : index
    %15 = vector.load %arg8[%c0_16, %c0_17] : memref<8x4xbf16, #tpu.memory_space<vmem>>, vector<8x4xbf16>
    %16 = arith.truncf %14 : vector<4x256xf32> to vector<4x256xbf16>
    %cst_18 = arith.constant dense<0.000000e+00> : vector<8x256xf32>
    %17 = tpu.matmul %15, %16, %cst_18 {dimension_numbers = #tpu.dot_dimension_numbers<[1], [0], [0], [1], [0, 0, 1, 1], [], []>} : vector<8x4xbf16>, vector<4x256xbf16>, vector<8x256xf32> -> vector<8x256xf32>
    %c0_19 = arith.constant 0 : index
    %c0_20 = arith.constant 0 : index
    %18 = vector.load %arg9[%c0_19, %c0_20] : memref<8x1xf32, #tpu.memory_space<vmem>>, vector<8x1xf32>
    %19 = vector.broadcast %18 : vector<8x1xf32> to vector<8x256xf32>
    %20 = arith.addf %17, %19 : vector<8x256xf32>
    %21 = arith.addf %20, %2 : vector<8x256xf32>
    %cst_21 = arith.constant 0.000000e+00 : f32
    %22 = vector.broadcast %cst_21 : f32 to vector<8x256xf32>
    %23 = arith.maximumf %21, %22 : vector<8x256xf32>
    %24 = arith.mulf %2, %6 : vector<8x256xf32>
    %25 = arith.addf %24, %2 : vector<8x256xf32>
    %c0_22 = arith.constant 0 : index
    %c0_23 = arith.constant 0 : index
    %26 = vector.load %arg10[%c0_22, %c0_23] : memref<8x8xbf16, #tpu.memory_space<vmem>>, vector<8x8xbf16>
    %27 = arith.truncf %25 : vector<8x256xf32> to vector<8x256xbf16>
    %cst_24 = arith.constant dense<0.000000e+00> : vector<8x256xf32>
    %28 = tpu.matmul %26, %27, %cst_24 {dimension_numbers = #tpu.dot_dimension_numbers<[1], [0], [0], [1], [0, 0, 1, 1], [], []>} : vector<8x8xbf16>, vector<8x256xbf16>, vector<8x256xf32> -> vector<8x256xf32>
    %c0_25 = arith.constant 0 : index
    %c0_26 = arith.constant 0 : index
    %29 = vector.load %arg11[%c0_25, %c0_26] : memref<8x8xbf16, #tpu.memory_space<vmem>>, vector<8x8xbf16>
    %30 = arith.truncf %23 : vector<8x256xf32> to vector<8x256xbf16>
    %cst_27 = arith.constant dense<0.000000e+00> : vector<8x256xf32>
    %31 = tpu.matmul %29, %30, %cst_27 {dimension_numbers = #tpu.dot_dimension_numbers<[1], [0], [0], [1], [0, 0, 1, 1], [], []>} : vector<8x8xbf16>, vector<8x256xbf16>, vector<8x256xf32> -> vector<8x256xf32>
    %32 = arith.addf %28, %31 : vector<8x256xf32>
    %c0_28 = arith.constant 0 : index
    %c0_29 = arith.constant 0 : index
    %33 = vector.load %arg12[%c0_28, %c0_29] : memref<8x1xf32, #tpu.memory_space<vmem>>, vector<8x1xf32>
    %34 = vector.broadcast %33 : vector<8x1xf32> to vector<8x256xf32>
    %35 = arith.addf %32, %34 : vector<8x256xf32>
    %c0_30 = arith.constant 0 : index
    %c0_31 = arith.constant 0 : index
    %c0_32 = arith.constant 0 : index
    %36 = vector.load %arg13[%c0_30, %c0_31, %c0_32] : memref<1x8x256xf32, #tpu.memory_space<vmem>>, vector<1x8x256xf32>
    %37 = vector.shape_cast %36 : vector<1x8x256xf32> to vector<8x256xf32>
    %38 = vector.shape_cast %35 : vector<8x256xf32> to vector<1x8x256xf32>
    tpu.vector_store %arg13[%c0_30, %c0_31, %c0_32], %38 {strides = array<i32>} : memref<1x8x256xf32, #tpu.memory_space<vmem>>, vector<1x8x256xf32>,
    return
  }
  func.func @transform_0(%arg0: i32, %arg1: i32) -> (i32, i32, i32) {
    %c0_i32 = arith.constant 0 : i32
    %c0_i32_0 = arith.constant 0 : i32
    return %arg0, %c0_i32, %arg1 : i32, i32, i32
  }
  func.func @transform_1(%arg0: i32, %arg1: i32) -> (i32, i32, i32) {
    %c0_i32 = arith.constant 0 : i32
    %c0_i32_0 = arith.constant 0 : i32
    %c0_i32_1 = arith.constant 0 : i32
    return %arg0, %c0_i32, %c0_i32_0 : i32, i32, i32
  }
  func.func @transform_2(%arg0: i32, %arg1: i32) -> (i32, i32) {
    %c0_i32 = arith.constant 0 : i32
    %c0_i32_0 = arith.constant 0 : i32
    return %c0_i32, %arg1 : i32, i32
  }
  func.func @transform_3(%arg0: i32, %arg1: i32) -> (i32, i32, i32) {
    %c0_i32 = arith.constant 0 : i32
    %c0_i32_0 = arith.constant 0 : i32
    %c0_i32_1 = arith.constant 0 : i32
    return %arg0, %c0_i32, %c0_i32_0 : i32, i32, i32
  }
  func.func @transform_4(%arg0: i32, %arg1: i32) -> (i32, i32) {
    %c0_i32 = arith.constant 0 : i32
    %c0_i32_0 = arith.constant 0 : i32
    %c0_i32_1 = arith.constant 0 : i32
    return %c0_i32, %c0_i32_0 : i32, i32
  }
  func.func @transform_5(%arg0: i32, %arg1: i32) -> (i32, i32) {
    %c0_i32 = arith.constant 0 : i32
    %c0_i32_0 = arith.constant 0 : i32
    %c0_i32_1 = arith.constant 0 : i32
    return %c0_i32, %c0_i32_0 : i32, i32
  }
  func.func @transform_6(%arg0: i32, %arg1: i32) -> (i32, i32) {
    %c0_i32 = arith.constant 0 : i32
    %c0_i32_0 = arith.constant 0 : i32
    %c0_i32_1 = arith.constant 0 : i32
    return %c0_i32, %c0_i32_0 : i32, i32
  }
  func.func @transform_7(%arg0: i32, %arg1: i32) -> (i32, i32) {
    %c0_i32 = arith.constant 0 : i32
    %c0_i32_0 = arith.constant 0 : i32
    %c0_i32_1 = arith.constant 0 : i32
    return %c0_i32, %c0_i32_0 : i32, i32
  }
  func.func @transform_8(%arg0: i32, %arg1: i32) -> (i32, i32) {
    %c0_i32 = arith.constant 0 : i32
    %c0_i32_0 = arith.constant 0 : i32
    %c0_i32_1 = arith.constant 0 : i32
    return %c0_i32, %c0_i32_0 : i32, i32
  }
  func.func @transform_9(%arg0: i32, %arg1: i32) -> (i32, i32) {
    %c0_i32 = arith.constant 0 : i32
    %c0_i32_0 = arith.constant 0 : i32
    %c0_i32_1 = arith.constant 0 : i32
    return %c0_i32, %c0_i32_0 : i32, i32
  }
  func.func @transform_10(%arg0: i32, %arg1: i32) -> (i32, i32) {
    %c0_i32 = arith.constant 0 : i32
    %c0_i32_0 = arith.constant 0 : i32
    %c0_i32_1 = arith.constant 0 : i32
    return %c0_i32, %c0_i32_0 : i32, i32
  }
  func.func @transform_11(%arg0: i32, %arg1: i32) -> (i32, i32, i32) {
    %c0_i32 = arith.constant 0 : i32
    %c0_i32_0 = arith.constant 0 : i32
    return %arg0, %c0_i32, %arg1 : i32, i32, i32
  }
}

</mosaic_0001>

<bundles_post_ra>
// kernel: dual_gcn_forward.2
= control target key start
LH: loop header
LB: loop body
LE: loop exit
PB: predicated region body
PF: predicated region fallthrough
CT: control target
= control target key end

     0   :  { %s589_s15 = smov 0   ;;  %s591_s16 = smov 0   ;;  %s638_s0 = inlined_call_operand.vmem [shape: bf16[2,8,256], index: 0, kind: input, shape index: {}]   ;;  %s639_s1 = inlined_call_operand.vmem [shape: bf16[6,8], index: 1, kind: input, shape index: {}]   ;;  %s640_s2 = inlined_call_operand.vmem [shape: f32[4,1], index: 2, kind: input, shape index: {}]   ;;  %s641_s3 = inlined_call_operand.vmem [shape: f32[2,1], index: 3, kind: input, shape index: {}]   ;;  %s642_s4 = inlined_call_operand.vmem [shape: f32[2,1,4,2], index: 4, kind: output, shape index: {}]  }
   0x1   :  { %s593_s17 = smov 0  }
   0x2 LB: > { %s29_s18 = sadd.s32 1, %s556_s16  ;;  %p498_p0 = scmp.ge.s32.totalorder %s560_s17, 1  ;;  %s560_s17 = sphi %s593_s17, %s14_s17   ;;  %s556_s16 = sphi %s591_s16, %s644_s16   ;;  %s552_s15 = sphi %s589_s15, %s643_s15  }
   0x3   : > { %p31_p1 = scmp.ge.s32.totalorder %s29_s18, 2  ;;  %p194_p2 = scmp.lt.s32.totalorder %s560_s17, 3 }
   0x5   : > { %s646_s18 = smov (%p31_p1, %s29_s18), 0  ;;  %p195_p3 = pnand %p498_p0, %p194_p2 }
   0x6   : > { %p229_p4 = scmp.lt.s32.totalorder (!%p195_p3), %s552_s15, 1  ;;  %v562_v0 = vmov (!%p195_p3), 0   ;;  %v320_v1 = vld [vmem:[%s641_s3] sm:$0x3] (!%p195_p3)  ;;  %vm264_vm0 = vcmask (!%p195_p3), 1043456   ;;  %vm260_vm1 = vcmask (!%p195_p3), 64512  }
   0x7   : > { %198 = sbr.rel (%p195_p3) target bundleno = 468 (0x1d4), region = 36  ;;  %303 = vmatprep.mubr.bf16.mxu0 (!%p195_p3), %v562_v0  ;;  %535 = vset.pattern.permute.xlu0 (!%p195_p3), %v562_v0  ;;  %v312_v2 = vld [vmem:[%s640_s2] sm:$0xf] (!%p195_p3)  ;;  %vm251_vm2 = vcmask (!%p195_p3), 11264   ;;  %v563_v8 = vmov (!%p195_p3), 0.0  }
   0x8   : > { %323 = vperm.xlu0 (!%p195_p3), %535, %v320_v1   ;;  %v253_v7 = vld [vmem:[%s639_s1] sm:$0x7] (!%p195_p3)  ;;  %252 = vst.msk [vmem:[#allocation2] sm:$0xf] (!%p195_p3), %vm251_vm2, %v563_v8 }
   0xc   : > { %315 = vperm.xlu0 (!%p195_p3), %535, %v312_v2  }
   0xe   : > { %s648_s15 = smov (!%p229_p4, %s552_s15), 1 }
   0xf   : > { %s508_s23 = sshll.u32 %s648_s15, 3  ;;  %v329_v22 = vld [vmem:[#allocation2] sm:$0xf]  ;;  %s501_s29 = sshll.u32 %s648_s15, 2 }
  0x10   : > { %s236_s26 = scalar_lea.vmem %s638_s0, %s508_s23  ;;  %s245_s6 = scalar_lea.vmem %s642_s4, %s501_s29 }
  0x11   : > { %v254_v3 = vld [vmem:[%s236_s26] sm:$0xff] }
  0x12   : > { %v503_v4 = vcombine.high %v254_v3, %v254_v3  ;;  %v502_v5 = vcombine.low %v254_v3, %v254_v3 }
  0x14   : > { %504 = vmatprep.subr.msk.bf16.mxu0 %vm264_vm0, %v503_v4  ;;  %v266_v6 = vsel %vm264_vm0, %v502_v5, 0 }
  0x15   : > { %272 = vmatpush1.bf16.msra.mxu0 %v266_v6 }
  0x18   : > { %505 = vmatmul.mubr.msk.bf16.vlgmr.msra.gmra.mrb[0].mxu0 %vm260_vm1, %v253_v7 }
  0x87   : > { %v324_v9 = vpop.permute.xlu0 %323 }
  0x88   : > { %v325_v10 = vrot.slane %v324_v9, 4 }
  0x8b   : > { %v316_v12 = vpop.permute.xlu0 %315 }
  0xeb   : > { %v305_v11 = vpop.f32.mrb[0].mxu0 }
  0xec   : > { %v327_v13 = vadd.f32 %v325_v10, %v305_v11  ;;  %v307_v14 = vpop.f32.mrb[1].mxu0  ;;  %v318_v21 = vadd.f32 %v316_v12, %v305_v11 }
  0xed   : > { %v309_v15 = vpop.f32.mrb[2].mxu0  ;;  %v319_v16 = vadd.f32 %v316_v12, %v307_v14  ;;  %v328_v17 = vadd.f32 %v325_v10, %v307_v14 }
  0xee   : > { %v310_v18 = vpop.f32.mrb[3].mxu0  ;;  %v332_v20 = vrot.slane %v327_v13, 4 }
  0xef   : > { %400 = vmatprep.mubr.f32.mxu1 %v319_v16  ;;  %v333_v19 = vrot.slane %v328_v17, 4 }
  0xf1   : > { %336 = vmatprep.subr.mxu1 %v333_v19 }
  0xf2   : > { %337 = vmatpush1.xpose.msra.mxu1 %v332_v20 }
  0xf5   : > { %401 = vmatmul.mubr.f32.vlgmr.msra.gmra.mrb[0].mxu1 %v318_v21 }
 0x1c8   : > { %v402_v23 = vpop.f32.mrb[0].mxu1 }
 0x1c9   : > { %v406_v24 = vadd.f32 %v402_v23, %v329_v22  ;;  %v404_v25 = vpop.f32.mrb[1].mxu1 }
 0x1cb   : > { %408 = vst.msk [vmem:[#allocation2] sm:$0xf] %vm251_vm2, %v406_v24 }
 0x1d2   : > { %v412_v26 = vld [vmem:[#allocation2] sm:$0xf] }
 0x1d3   : > { %413 = vst.msk [vmem:[%s245_s6] sm:$0xf] %vm251_vm2, %v412_v26 }
 0x1d4 PF: > { %s14_s17 = sadd.s32 1, %s560_s17   ;;  %s643_s15 = smov %s556_s16 }
 0x1d5   : > { %p11_p5 = scmp.ge.s32.totalorder %s14_s17, 4   ;;  %s644_s16 = smov %s646_s18 }
 0x1d7   :  { %13 = sbr.rel (!%p11_p5) target bundleno = 2 (0x2), region = 74 }

// kernel: dual_gcn_forward.3
= control target key start
LH: loop header
LB: loop body
LE: loop exit
PB: predicated region body
PF: predicated region fallthrough
CT: control target
= control target key end

     0   :  { %s1152_s17 = smov 0   ;;  %s1154_s18 = smov 0   ;;  %s1244_s0 = inlined_call_operand.vmem [shape: bf16[2,8,256], index: 0, kind: input, shape index: {}]   ;;  %s1245_s1 = inlined_call_operand.vmem [shape: bf16[2,8,4], index: 1, kind: input, shape index: {}]   ;;  %s1246_s2 = inlined_call_operand.vmem [shape: bf16[4,256], index: 2, kind: input, shape index: {}]   ;;  %s1247_s3 = inlined_call_operand.vmem [shape: f32[2,4,2], index: 3, kind: input, shape index: {}]   ;;  %s1248_s4 = inlined_call_operand.vmem [shape: bf16[2,8], index: 4, kind: input, shape index: {}]   ;;  %s1249_s5 = inlined_call_operand.vmem [shape: f32[2,1], index: 5, kind: input, shape index: {}]   ;;  %s1250_s6 = inlined_call_operand.vmem [shape: bf16[8,4], index: 6, kind: input, shape index: {}]   ;;  %s1251_s7 = inlined_call_operand.vmem [shape: f32[8,1], index: 7, kind: input, shape index: {}]   ;;  %s1252_s8 = inlined_call_operand.vmem [shape: bf16[8,8], index: 8, kind: input, shape index: {}]   ;;  %s1253_s9 = inlined_call_operand.vmem [shape: bf16[8,8], index: 9, kind: input, shape index: {}]   ;;  %s1254_s10 = inlined_call_operand.vmem [shape: f32[8,1], index: 10, kind: input, shape index: {}]   ;;  %s1255_s11 = inlined_call_operand.vmem [shape: f32[2,8,256], index: 11, kind: output, shape index: {}]  }
   0x1   :  { %s1156_s19 = smov 0  }
   0x2 LB: > { %s33_s20 = sadd.s32 1, %s1084_s18  ;;  %p1009_p0 = scmp.ge.s32.totalorder %s1088_s19, 1  ;;  %s1088_s19 = sphi %s1156_s19, %s21_s19   ;;  %s1084_s18 = sphi %s1154_s18, %s1257_s18   ;;  %s1080_s17 = sphi %s1152_s17, %s1256_s17  }
   0x3   : > { %p35_p1 = scmp.ge.s32.totalorder %s33_s20, 2  ;;  %p387_p2 = scmp.lt.s32.totalorder %s1088_s19, 3 }
   0x5   : > { %s1259_s20 = smov (%p35_p1, %s33_s20), 0  ;;  %p388_p3 = pnand %p1009_p0, %p387_p2 }
   0x6   : > { %p449_p4 = scmp.lt.s32.totalorder (!%p388_p3), %s1080_s17, 1  ;;  %v1090_v0 = vmov (!%p388_p3), 0   ;;  %v550_v1 = vld [vmem:[%s1249_s5] sm:$0x3] (!%p388_p3)  ;;  %vm501_vm0 = vcmask (!%p388_p3), 1041408   ;;  %vm565_vm1 = vcmask (!%p388_p3), 1043456  }
   0x7   : > { %391 = sbr.rel (%p388_p3) target bundleno = 903 (0x387), region = 64  ;;  %604 = vmatprep.mubr.bf16.mxu1 (!%p388_p3), %v1090_v0  ;;  %1062 = vset.pattern.permute.xlu0 (!%p388_p3), %v1090_v0  ;;  %v1016_v2 = vld.sshfl [vmem:[%s1246_s2] sm:$0x33 pattern:$0x76325410] (!%p388_p3)  ;;  %vm497_vm2 = vcmask (!%p388_p3), 31744  }
   0x8   : > { %553 = vperm.xlu0 (!%p388_p3), %1062, %v550_v1   ;;  %540 = vmatprep.mubr.bf16.mxu0 (!%p388_p3), %v1090_v0  ;;  %v698_v3 = vld [vmem:[%s1251_s7] sm:$0xff] (!%p388_p3)  ;;  %v496_v4 = vcombine.high (!%p388_p3), %v1016_v2, %v1016_v2  ;;  %v503_v5 = vsel (!%p388_p3), %vm501_vm0, %v1016_v2, 0  ;;  %vm561_vm3 = vcmask (!%p388_p3), 64512   ;;  %v1091_v12 = vmov (!%p388_p3), 0.0  }
   0x9   : > { %1063 = vset.pattern.permute.xlu1 (!%p388_p3), %v1090_v0  ;;  %v549_v11 = vld [vmem:[%s1248_s4] sm:$0x1] (!%p388_p3)  ;;  %vm614_vm4 = vcmask (!%p388_p3), 15360  }
   0xa   : > { %1017 = vmatprep.subr.msk.bf16.mxu0 (!%p388_p3), %vm501_vm0, %v496_v4  ;;  %v695_v38 = vld [vmem:[%s1250_s6] sm:$0xf] (!%p388_p3) }
   0xb   : > { %509 = vmatpush1.bf16.msra.mxu0 (!%p388_p3), %v503_v5  ;;  %v762_v40 = vld [vmem:[%s1252_s8] sm:$0xf] (!%p388_p3) }
   0xc   : > { %701 = vperm.xlu0 (!%p388_p3), %1062, %v698_v3   ;;  %v868_v41 = vld [vmem:[%s1254_s10] sm:$0xff] (!%p388_p3) }
   0xd   : > { %871 = vperm.xlu1 (!%p388_p3), %1063, %v868_v41   ;;  %v765_v56 = vld [vmem:[%s1253_s9] sm:$0xf] (!%p388_p3) }
   0xe   : > { %s1261_s17 = smov (!%p449_p4, %s1080_s17), 1 }
   0xf   : > { %s1034_s27 = sshll.u32 %s1261_s17, 3  ;;  %s1012_s28 = sshll.u32 %s1261_s17, 2 }
  0x10   : > { %s456_s12 = scalar_lea.vmem %s1244_s0, %s1034_s27  ;;  %s461_s15 = scalar_lea.vmem %s1245_s1, %s1012_s28 }
  0x11   : > { %v483_v6 = vld [vmem:[%s456_s12] sm:$0xff]  ;;  %s471_s24 = scalar_lea.vmem %s1247_s3, %s1012_s28  ;;  %s1035_s14 = sshll.u32 %s1261_s17, 4 }
  0x12   : > { %v486_v7 = vld [vmem:[%s461_s15] sm:$0xf]  ;;  %v1020_v8 = vcombine.high %v483_v6, %v483_v6  ;;  %v1019_v9 = vcombine.low %v483_v6, %v483_v6  ;;  %v484_v25 = vunpack.c.l.bf16 %v483_v6  ;;  %v485_v26 = vunpack.c.h.bf16 %v483_v6  ;;  %s480_s21 = scalar_lea.vmem %s1255_s11, %s1035_s14 }
  0x13   : > { %1018 = vmatmul.mubr.msk.bf16.vlgmr.msra.gmra.mrb[0].mxu0 %vm497_vm2, %v486_v7  ;;  %v613_v24 = vld [vmem:[%s471_s24] sm:$0xf] }
  0x14   : > { %1021 = vmatprep.subr.msk.bf16.mxu1 %vm565_vm1, %v1020_v8  ;;  %v567_v10 = vsel %vm565_vm1, %v1019_v9, 0  ;;  %688 = vmatprep.mubr.f32.mxu0 %v1091_v12 }
  0x15   : > { %573 = vmatpush1.bf16.msra.mxu1 %v567_v10 }
  0x18   : > { %1022 = vmatmul.mubr.msk.bf16.vlgmr.msra.gmra.mrb[0].mxu1 %vm561_vm3, %v549_v11 }
  0x19   : > { %745 = vmatprep.mubr.bf16.mxu1 %v1090_v0 }
  0x87   : > { %v554_v18 = vpop.permute.xlu0 %553 }
  0x8b   : > { %v702_v42 = vpop.permute.xlu0 %701 }
  0x8c   : > { %v872_v62 = vpop.permute.xlu1 %871 }
  0xe6   : > { %v542_v13 = vpop.f32.mrb[0].mxu0 }
  0xe7   : > { %v544_v14 = vpop.f32.mrb[1].mxu0  ;;  %v758_v27 = vmul.f32 %v542_v13, %v484_v25 }
  0xe8   : > { %v546_v15 = vpop.f32.mrb[2].mxu0  ;;  %v759_v28 = vmul.f32 %v544_v14, %v485_v26 }
  0xe9   : > { %v547_v16 = vpop.f32.mrb[3].mxu0  ;;  %v760_v29 = vadd.f32 %v758_v27, %v484_v25 }
  0xea   : > { %v761_v30 = vadd.f32 %v759_v28, %v485_v26 }
  0xeb   : > { %v606_v17 = vpop.f32.mrb[0].mxu1  ;;  %v763_v36 = vpack.c.bf16 %v760_v29, %v760_v29 }
  0xec   : > { %v608_v19 = vpop.f32.mrb[1].mxu1  ;;  %v607_v22 = vadd.f32 %v606_v17, %v554_v18  ;;  %v764_v37 = vpack.c.bf16 %v761_v30, %v761_v30 }
  0xed   : > { %v609_v20 = vadd.f32 %v608_v19, %v554_v18  ;;  %v610_v21 = vpop.f32.mrb[2].mxu1  ;;  %v822_v39 = vsel %vm565_vm1, %v763_v36, 0 }
  0xee   : > { %v611_v23 = vpop.f32.mrb[3].mxu1 }
  0xef   : > { %1023 = vmatprep.subr.msk.mxu0 %vm501_vm0, %v609_v20 }
  0xf0   : > { %1024 = vmatpush1.msk.msra.mxu0 %vm501_vm0, %v607_v22 }
  0xf1   : > { %1025 = vmatmul.mubr.msk.f32.vlgmr.msra.gmra.mrb[4].mxu0 %vm614_vm4, %v613_v24 }
  0xf2   : > { %809 = vmatprep.mubr.bf16.mxu0 %v1090_v0 }
 0x1c4   : > { %v690_v31 = vpop.f32.mrb[4].mxu0 }
 0x1c5   : > { %v696_v32 = vpack.c.bf16 %v690_v31, %v690_v31  ;;  %v692_v33 = vpop.f32.mrb[5].mxu0 }
 0x1c6   : > { %v697_v34 = vpack.c.bf16 %v692_v33, %v692_v33 }
 0x1c7   : > { %v708_v35 = vsel %vm501_vm0, %v696_v32, 0 }
 0x1c8   : > { %1026 = vmatprep.subr.msk.bf16.mxu1 %vm501_vm0, %v697_v34 }
 0x1c9   : > { %714 = vmatpush1.bf16.msra.mxu1 %v708_v35 }
 0x1ca   : > { %1030 = vmatprep.subr.msk.bf16.mxu1 %vm565_vm1, %v764_v37 }
 0x1cc   : > { %1027 = vmatmul.mubr.msk.bf16.vlgmr.msra.gmra.mrb[4].mxu1 %vm497_vm2, %v695_v38 }
 0x1cd   : > { %828 = vmatpush1.bf16.msra.mxu1 %v822_v39  ;;  %859 = vmatprep.mubr.bf16.mxu1 %v1090_v0 }
 0x1d4   : > { %1031 = vmatmul.mubr.msk.bf16.vlgmr.msra.gmra.mrb[8].mxu1 %vm561_vm3, %v762_v40 }
 0x29f   : > { %v747_v43 = vpop.f32.mrb[4].mxu1 }
 0x2a0   : > { %v748_v44 = vadd.f32 %v747_v43, %v702_v42  ;;  %v749_v45 = vpop.f32.mrb[5].mxu1 }
 0x2a1   : > { %v750_v46 = vadd.f32 %v749_v45, %v702_v42  ;;  %v751_v47 = vpop.f32.mrb[6].mxu1 }
 0x2a2   : > { %v754_v48 = vadd.f32 %v748_v44, %v484_v25  ;;  %v752_v49 = vpop.f32.mrb[7].mxu1 }
 0x2a3   : > { %v755_v50 = vadd.f32 %v750_v46, %v485_v26 }
 0x2a4   : > { %v756_v51 = vmax.f32 %v754_v48, 0.0 }
 0x2a5   : > { %v757_v52 = vmax.f32 %v755_v50, 0.0 }
 0x2a6   : > { %v766_v53 = vpack.c.bf16 %v756_v51, %v756_v51 }
 0x2a7   : > { %v767_v54 = vpack.c.bf16 %v757_v52, %v757_v52  ;;  %v861_v57 = vpop.f32.mrb[8].mxu1 }
 0x2a8   : > { %v772_v55 = vsel %vm565_vm1, %v766_v53, 0  ;;  %v863_v58 = vpop.f32.mrb[9].mxu1 }
 0x2a9   : > { %1028 = vmatprep.subr.msk.bf16.mxu0 %vm565_vm1, %v767_v54  ;;  %v865_v59 = vpop.f32.mrb[10].mxu1 }
 0x2aa   : > { %778 = vmatpush1.bf16.msra.mxu0 %v772_v55  ;;  %v866_v60 = vpop.f32.mrb[11].mxu1 }
 0x2ad   : > { %1029 = vmatmul.mubr.msk.bf16.vlgmr.msra.gmra.mrb[8].mxu0 %vm561_vm3, %v765_v56 }
 0x380   : > { %v811_v61 = vpop.f32.mrb[8].mxu0 }
 0x381   : > { %v862_v63 = vadd.f32 %v861_v57, %v811_v61  ;;  %v813_v0 = vpop.f32.mrb[9].mxu0 }
 0x382   : > { %v864_v1 = vadd.f32 %v863_v58, %v813_v0  ;;  %v815_v2 = vpop.f32.mrb[10].mxu0 }
 0x383   : > { %v816_v3 = vpop.f32.mrb[11].mxu0  ;;  %v874_v4 = vadd.f32 %v872_v62, %v862_v63 }
 0x384   : > { %v875_v5 = vadd.f32 %v872_v62, %v864_v1 }
 0x385   : > { %876 = vst [vmem:[%s480_s21] sm:$0xff] %v874_v4 }
 0x386   : > { %877 = vst [vmem:[%s480_s21 + $0x8] sm:$0xff] %v875_v5 }
 0x387 PF: > { %s21_s19 = sadd.s32 1, %s1088_s19   ;;  %s1256_s17 = smov %s1084_s18 }
 0x388   : > { %p18_p5 = scmp.ge.s32.totalorder %s21_s19, 4   ;;  %s1257_s18 = smov %s1259_s20 }
 0x38a   :  { %20 = sbr.rel (!%p18_p5) target bundleno = 2 (0x2), region = 103 }

</bundles_post_ra>
